<compile_context>
chip_gen: v6e
topology: v6e:2x2x1
jax: 0.10.0
libtpu: 0.0.40
codegen_flags: <defaults>
</compile_context>

<pallas_src>
import jax
import jax.numpy as jnp
from jax import lax
from jax.experimental import pallas as pl
from jax.experimental.pallas import tpu as pltpu  # noqa: F401  (not needed for this single-block kernel)

# ----------------------------------------------------------------------------
# Small, module-consistent hyperparameters (synthetic; not checkpoint sizes).
# ----------------------------------------------------------------------------
B = 2             # batch
T = 16            # sequence length (<= block_size)
N_EMBD = 32       # embedding dim C
NUM_HEADS = 4
HEAD_SIZE = N_EMBD // NUM_HEADS   # 8


# ----------------------------------------------------------------------------
# Fused kernel: single grid step over the flattened (B*T, C) batch.
#   qkv  = x @ W_qkv            (one wide MXU matmul; Q cols pre-scaled)
#   per batch b, per head h:
#       s  = q_h k_h^T + causal_bias ; softmax ; o_h = s v_h
#       acc += o_h @ W_proj[h*hs:(h+1)*hs, :]
#   out rows for b = acc (acc starts from the projection bias)
# ----------------------------------------------------------------------------
def mha_fused_kernel(x_ref, wqkv_ref, wp_ref, bp_ref, o_ref):
    x = x_ref[...]                     # (B*T, C) f32
    w_qkv = wqkv_ref[...]              # (C, 3*C); Q columns already * C**-0.5
    w_p = wp_ref[...]                  # (C, C)
    bias_b = jnp.broadcast_to(bp_ref[...], (T, N_EMBD))   # built once

    # One wide MXU push for all batch rows and all heads' Q, K, V.
    qkv = jnp.dot(x, w_qkv, preferred_element_type=jnp.float32)   # (B*T, 3*C)

    # Causal additive bias, built once (outside both unrolled loops).
    row = lax.broadcasted_iota(jnp.int32, (T, T), 0)
    col = lax.broadcasted_iota(jnp.int32, (T, T), 1)
    neg_bias = jnp.where(col <= row, 0.0, -1e30)                  # (T, T) f32

    for b in range(B):                 # static unroll (B = 2)
        r0 = b * T
        acc = bias_b                   # fold projection bias into accumulator
        for h in range(NUM_HEADS):     # static unroll (H = 4)
            c0 = h * HEAD_SIZE
            # Slice q/k/v for this head directly out of qkv (no q/k/v temps).
            qh = qkv[r0:r0 + T, c0:c0 + HEAD_SIZE]                          # (T, hs)
            kh = qkv[r0:r0 + T, N_EMBD + c0:N_EMBD + c0 + HEAD_SIZE]        # (T, hs)
            vh = qkv[r0:r0 + T, 2 * N_EMBD + c0:2 * N_EMBD + c0 + HEAD_SIZE]

            # q @ k^T (contraction over head_size, no transposed copy) + mask.
            s = lax.dot_general(
                qh, kh, (((1,), (1,)), ((), ())),
                preferred_element_type=jnp.float32,
            ) + neg_bias                                                    # (T, T)

            # Numerically stable softmax; reciprocal goes to the EUP slot.
            s = s - jnp.max(s, axis=-1, keepdims=True)
            p = jnp.exp(s)
            p = p * pl.reciprocal(jnp.sum(p, axis=-1, keepdims=True), approx=True)

            oh = jnp.dot(p, vh, preferred_element_type=jnp.float32)        # (T, hs)

            # Fused concat + projection: accumulate per-head contribution.
            acc = acc + jnp.dot(
                oh, w_p[c0:c0 + HEAD_SIZE, :],
                preferred_element_type=jnp.float32,
            )

        o_ref[r0:r0 + T, :] = acc.astype(o_ref.dtype)


def multi_head_attention(x, packed):
    """x: (B, T, C); packed: {w_qkv (C,3C), w_proj (C,C), b_proj (1,C)} -> (B, T, C)."""
    x2d = x.reshape(B * T, N_EMBD)     # free: row-major contiguous
    out2d = pl.pallas_call(
        mha_fused_kernel,
        out_shape=jax.ShapeDtypeStruct((B * T, N_EMBD), jnp.float32),
        grid=(1,),                     # single step: whole problem is one block
        in_specs=[
            pl.BlockSpec((B * T, N_EMBD), lambda i: (0, 0)),
            pl.BlockSpec((N_EMBD, 3 * N_EMBD), lambda i: (0, 0)),
            pl.BlockSpec((N_EMBD, N_EMBD), lambda i: (0, 0)),
            pl.BlockSpec((1, N_EMBD), lambda i: (0, 0)),
        ],
        out_specs=pl.BlockSpec((B * T, N_EMBD), lambda i: (0, 0)),
    )(x2d, packed["w_qkv"], packed["w_proj"], packed["b_proj"])
    return out2d.reshape(B, T, N_EMBD)


# ----------------------------------------------------------------------------
# Parameter handling.
# ----------------------------------------------------------------------------
def init_params(key):
    """Per-head weights as (H, C, hs) (already x @ W orientation), plus proj."""
    ks = jax.random.split(key, 5)
    s = 0.02
    return {
        "wq": s * jax.random.normal(ks[0], (NUM_HEADS, N_EMBD, HEAD_SIZE), jnp.float32),
        "wk": s * jax.random.normal(ks[1], (NUM_HEADS, N_EMBD, HEAD_SIZE), jnp.float32),
        "wv": s * jax.random.normal(ks[2], (NUM_HEADS, N_EMBD, HEAD_SIZE), jnp.float32),
        "w_proj": s * jax.random.normal(ks[3], (N_EMBD, N_EMBD), jnp.float32),
        "b_proj": s * jax.random.normal(ks[4], (1, N_EMBD), jnp.float32),
    }


def pack_params(params):
    """One-time packing: (H,C,hs) x3 -> (C, 3*H*hs); attention scale C**-0.5
    is folded into the Q columns so the kernel does zero per-call scaling."""
    def flat(w):   # (H, C, hs) -> (C, H*hs) with column = h*hs + d
        return jnp.transpose(w, (1, 0, 2)).reshape(N_EMBD, NUM_HEADS * HEAD_SIZE)
    scale = float(N_EMBD) ** -0.5      # matches bigram.py Head: C ** -0.5
    return {
        "w_qkv": jnp.concatenate(
            [flat(params["wq"]) * scale, flat(params["wk"]), flat(params["wv"])],
            axis=-1,
        ),
        "w_proj": params["w_proj"],
        "b_proj": params["b_proj"],
    }


def mha_reference(x, params):
    """Pure-JAX reference matching the PyTorch module (eval mode)."""
    mask = jnp.tril(jnp.ones((T, T), dtype=bool))
    outs = []
    for h in range(NUM_HEADS):
        q = x @ params["wq"][h]
        k = x @ params["wk"][h]
        v = x @ params["wv"][h]
        wei = q @ jnp.swapaxes(k, -2, -1) * (N_EMBD ** -0.5)
        wei = jnp.where(mask, wei, -jnp.inf)
        wei = jax.nn.softmax(wei, axis=-1)
        outs.append(wei @ v)
    cat = jnp.concatenate(outs, axis=-1)
    return cat @ params["w_proj"] + params["b_proj"]


if __name__ == "__main__":
    key = jax.random.PRNGKey(0)
    k_x, k_p = jax.random.split(key)
    x = jax.random.normal(k_x, (B, T, N_EMBD), jnp.float32)
    params = init_params(k_p)
    packed = pack_params(params)

    out = multi_head_attention(x, packed)
    out = jax.block_until_ready(out)

    assert out.shape == (B, T, N_EMBD), out.shape
    assert jnp.all(jnp.isfinite(out)), "non-finite output"

    with jax.default_matmul_precision("highest"):
        ref = mha_reference(x, params)
    err = float(jnp.max(jnp.abs(out - ref)))
    assert err < 2e-3, f"max abs error vs reference: {err}"

    print("KERNEL_OK")
</pallas_src>

<mosaic_0001>
module attributes {stable_mosaic.version = 11 : i64} {
  func.func @mha_fused_kernel(%arg0: i32, %arg1: memref<32x32xf32, #tpu.memory_space<vmem>>, %arg2: memref<32x96xf32, #tpu.memory_space<vmem>>, %arg3: memref<32x32xf32, #tpu.memory_space<vmem>>, %arg4: memref<1x32xf32, #tpu.memory_space<vmem>>, %arg5: memref<32x32xf32, #tpu.memory_space<vmem>>) attributes {dimension_semantics = [#tpu.dimension_semantics<arbitrary>], iteration_bounds = array<i64: 1>, scalar_prefetch = 0 : i64, scratch_operands = 0 : i64, tpu.core_type = #tpu.core_type<tc>, window_params = [{pipeline_mode = #tpu.pipeline_mode<synchronous>, transform_indices = @transform_0, window_bounds = array<i64: 32, 32>}, {pipeline_mode = #tpu.pipeline_mode<synchronous>, transform_indices = @transform_1, window_bounds = array<i64: 32, 96>}, {pipeline_mode = #tpu.pipeline_mode<synchronous>, transform_indices = @transform_2, window_bounds = array<i64: 32, 32>}, {pipeline_mode = #tpu.pipeline_mode<synchronous>, transform_indices = @transform_3, window_bounds = array<i64: 1, 32>}, {pipeline_mode = #tpu.pipeline_mode<synchronous>, transform_indices = @transform_4, window_bounds = array<i64: 32, 32>}]} {
    %c0 = arith.constant 0 : index
    %c0_0 = arith.constant 0 : index
    %0 = vector.load %arg1[%c0, %c0_0] : memref<32x32xf32, #tpu.memory_space<vmem>>, vector<32x32xf32>
    %c0_1 = arith.constant 0 : index
    %c0_2 = arith.constant 0 : index
    %1 = vector.load %arg2[%c0_1, %c0_2] : memref<32x96xf32, #tpu.memory_space<vmem>>, vector<32x96xf32>
    %c0_3 = arith.constant 0 : index
    %c0_4 = arith.constant 0 : index
    %2 = vector.load %arg3[%c0_3, %c0_4] : memref<32x32xf32, #tpu.memory_space<vmem>>, vector<32x32xf32>
    %c0_5 = arith.constant 0 : index
    %c0_6 = arith.constant 0 : index
    %3 = vector.load %arg4[%c0_5, %c0_6] : memref<1x32xf32, #tpu.memory_space<vmem>>, vector<1x32xf32>
    %4 = vector.shape_cast %3 : vector<1x32xf32> to vector<1x32xf32>
    %5 = vector.broadcast %4 : vector<1x32xf32> to vector<16x32xf32>
    %cst = arith.constant dense<0.000000e+00> : vector<32x96xf32>
    %6 = tpu.matmul %0, %1, %cst {dimension_numbers = #tpu.dot_dimension_numbers<[1], [0], [0], [1], [0, 0, 1, 1], [], []>} : vector<32x32xf32>, vector<32x96xf32>, vector<32x96xf32> -> vector<32x96xf32>
    %7 = tpu.iota {dimensions = array<i32: 0>} : vector<16x16xi32>
    %8 = tpu.iota {dimensions = array<i32: 1>} : vector<16x16xi32>
    %9 = arith.cmpi sle, %8, %7 : vector<16x16xi32>
    %cst_7 = arith.constant 0.000000e+00 : f32
    %cst_8 = arith.constant -1.000000e+30 : f32
    %10 = vector.broadcast %cst_7 : f32 to vector<16x16xf32>
    %11 = vector.broadcast %cst_8 : f32 to vector<16x16xf32>
    %12 = arith.select %9, %10, %11 : vector<16x16xi1>, vector<16x16xf32>
    %13 = vector.extract_strided_slice %6 {offsets = [0, 0], sizes = [16, 8], strides = [1, 1]} : vector<32x96xf32> to vector<16x8xf32>
    %14 = vector.extract_strided_slice %6 {offsets = [0, 32], sizes = [16, 8], strides = [1, 1]} : vector<32x96xf32> to vector<16x8xf32>
    %15 = vector.extract_strided_slice %6 {offsets = [0, 64], sizes = [16, 8], strides = [1, 1]} : vector<32x96xf32> to vector<16x8xf32>
    %cst_9 = arith.constant dense<0.000000e+00> : vector<16x16xf32>
    %16 = tpu.matmul %13, %14, %cst_9 {dimension_numbers = #tpu.dot_dimension_numbers<[1], [1], [0], [0], [0, 0, 1, 0], [], []>} : vector<16x8xf32>, vector<16x8xf32>, vector<16x16xf32> -> vector<16x16xf32>
    %17 = arith.addf %16, %12 : vector<16x16xf32>
    %cst_10 = arith.constant dense<0xFF800000> : vector<16xf32>
    %18 = vector.multi_reduction <maximumf>, %17, %cst_10 [1] : vector<16x16xf32> to vector<16xf32>
    %19 = vector.shape_cast %18 : vector<16xf32> to vector<16x1xf32>
    %20 = vector.broadcast %19 : vector<16x1xf32> to vector<16x16xf32>
    %21 = arith.subf %17, %20 : vector<16x16xf32>
    %22 = math.exp %21 : vector<16x16xf32>
    %cst_11 = arith.constant dense<0.000000e+00> : vector<16xf32>
    %23 = vector.multi_reduction <add>, %22, %cst_11 [1] : vector<16x16xf32> to vector<16xf32>
    %24 = vector.shape_cast %23 : vector<16xf32> to vector<16x1xf32>
    %25 = tpu.reciprocal %24 {approx = true} : vector<16x1xf32> -> vector<16x1xf32>
    %26 = vector.broadcast %25 : vector<16x1xf32> to vector<16x16xf32>
    %27 = arith.mulf %22, %26 : vector<16x16xf32>
    %cst_12 = arith.constant dense<0.000000e+00> : vector<16x8xf32>
    %28 = tpu.matmul %27, %15, %cst_12 {dimension_numbers = #tpu.dot_dimension_numbers<[1], [0], [0], [1], [0, 0, 1, 1], [], []>} : vector<16x16xf32>, vector<16x8xf32>, vector<16x8xf32> -> vector<16x8xf32>
    %29 = vector.extract_strided_slice %2 {offsets = [0, 0], sizes = [8, 32], strides = [1, 1]} : vector<32x32xf32> to vector<8x32xf32>
    %cst_13 = arith.constant dense<0.000000e+00> : vector<16x32xf32>
    %30 = tpu.matmul %28, %29, %cst_13 {dimension_numbers = #tpu.dot_dimension_numbers<[1], [0], [0], [1], [0, 0, 1, 1], [], []>} : vector<16x8xf32>, vector<8x32xf32>, vector<16x32xf32> -> vector<16x32xf32>
    %31 = arith.addf %5, %30 : vector<16x32xf32>
    %32 = vector.extract_strided_slice %6 {offsets = [0, 8], sizes = [16, 8], strides = [1, 1]} : vector<32x96xf32> to vector<16x8xf32>
    %33 = vector.extract_strided_slice %6 {offsets = [0, 40], sizes = [16, 8], strides = [1, 1]} : vector<32x96xf32> to vector<16x8xf32>
    %34 = vector.extract_strided_slice %6 {offsets = [0, 72], sizes = [16, 8], strides = [1, 1]} : vector<32x96xf32> to vector<16x8xf32>
    %cst_14 = arith.constant dense<0.000000e+00> : vector<16x16xf32>
    %35 = tpu.matmul %32, %33, %cst_14 {dimension_numbers = #tpu.dot_dimension_numbers<[1], [1], [0], [0], [0, 0, 1, 0], [], []>} : vector<16x8xf32>, vector<16x8xf32>, vector<16x16xf32> -> vector<16x16xf32>
    %36 = arith.addf %35, %12 : vector<16x16xf32>
    %cst_15 = arith.constant dense<0xFF800000> : vector<16xf32>
    %37 = vector.multi_reduction <maximumf>, %36, %cst_15 [1] : vector<16x16xf32> to vector<16xf32>
    %38 = vector.shape_cast %37 : vector<16xf32> to vector<16x1xf32>
    %39 = vector.broadcast %38 : vector<16x1xf32> to vector<16x16xf32>
    %40 = arith.subf %36, %39 : vector<16x16xf32>
    %41 = math.exp %40 : vector<16x16xf32>
    %cst_16 = arith.constant dense<0.000000e+00> : vector<16xf32>
    %42 = vector.multi_reduction <add>, %41, %cst_16 [1] : vector<16x16xf32> to vector<16xf32>
    %43 = vector.shape_cast %42 : vector<16xf32> to vector<16x1xf32>
    %44 = tpu.reciprocal %43 {approx = true} : vector<16x1xf32> -> vector<16x1xf32>
    %45 = vector.broadcast %44 : vector<16x1xf32> to vector<16x16xf32>
    %46 = arith.mulf %41, %45 : vector<16x16xf32>
    %cst_17 = arith.constant dense<0.000000e+00> : vector<16x8xf32>
    %47 = tpu.matmul %46, %34, %cst_17 {dimension_numbers = #tpu.dot_dimension_numbers<[1], [0], [0], [1], [0, 0, 1, 1], [], []>} : vector<16x16xf32>, vector<16x8xf32>, vector<16x8xf32> -> vector<16x8xf32>
    %48 = vector.extract_strided_slice %2 {offsets = [8, 0], sizes = [8, 32], strides = [1, 1]} : vector<32x32xf32> to vector<8x32xf32>
    %cst_18 = arith.constant dense<0.000000e+00> : vector<16x32xf32>
    %49 = tpu.matmul %47, %48, %cst_18 {dimension_numbers = #tpu.dot_dimension_numbers<[1], [0], [0], [1], [0, 0, 1, 1], [], []>} : vector<16x8xf32>, vector<8x32xf32>, vector<16x32xf32> -> vector<16x32xf32>
    %50 = arith.addf %31, %49 : vector<16x32xf32>
    %51 = vector.extract_strided_slice %6 {offsets = [0, 16], sizes = [16, 8], strides = [1, 1]} : vector<32x96xf32> to vector<16x8xf32>
    %52 = vector.extract_strided_slice %6 {offsets = [0, 48], sizes = [16, 8], strides = [1, 1]} : vector<32x96xf32> to vector<16x8xf32>
    %53 = vector.extract_strided_slice %6 {offsets = [0, 80], sizes = [16, 8], strides = [1, 1]} : vector<32x96xf32> to vector<16x8xf32>
    %cst_19 = arith.constant dense<0.000000e+00> : vector<16x16xf32>
    %54 = tpu.matmul %51, %52, %cst_19 {dimension_numbers = #tpu.dot_dimension_numbers<[1], [1], [0], [0], [0, 0, 1, 0], [], []>} : vector<16x8xf32>, vector<16x8xf32>, vector<16x16xf32> -> vector<16x16xf32>
    %55 = arith.addf %54, %12 : vector<16x16xf32>
    %cst_20 = arith.constant dense<0xFF800000> : vector<16xf32>
    %56 = vector.multi_reduction <maximumf>, %55, %cst_20 [1] : vector<16x16xf32> to vector<16xf32>
    %57 = vector.shape_cast %56 : vector<16xf32> to vector<16x1xf32>
    %58 = vector.broadcast %57 : vector<16x1xf32> to vector<16x16xf32>
    %59 = arith.subf %55, %58 : vector<16x16xf32>
    %60 = math.exp %59 : vector<16x16xf32>
    %cst_21 = arith.constant dense<0.000000e+00> : vector<16xf32>
    %61 = vector.multi_reduction <add>, %60, %cst_21 [1] : vector<16x16xf32> to vector<16xf32>
    %62 = vector.shape_cast %61 : vector<16xf32> to vector<16x1xf32>
    %63 = tpu.reciprocal %62 {approx = true} : vector<16x1xf32> -> vector<16x1xf32>
    %64 = vector.broadcast %63 : vector<16x1xf32> to vector<16x16xf32>
    %65 = arith.mulf %60, %64 : vector<16x16xf32>
    %cst_22 = arith.constant dense<0.000000e+00> : vector<16x8xf32>
    %66 = tpu.matmul %65, %53, %cst_22 {dimension_numbers = #tpu.dot_dimension_numbers<[1], [0], [0], [1], [0, 0, 1, 1], [], []>} : vector<16x16xf32>, vector<16x8xf32>, vector<16x8xf32> -> vector<16x8xf32>
    %67 = vector.extract_strided_slice %2 {offsets = [16, 0], sizes = [8, 32], strides = [1, 1]} : vector<32x32xf32> to vector<8x32xf32>
    %cst_23 = arith.constant dense<0.000000e+00> : vector<16x32xf32>
    %68 = tpu.matmul %66, %67, %cst_23 {dimension_numbers = #tpu.dot_dimension_numbers<[1], [0], [0], [1], [0, 0, 1, 1], [], []>} : vector<16x8xf32>, vector<8x32xf32>, vector<16x32xf32> -> vector<16x32xf32>
    %69 = arith.addf %50, %68 : vector<16x32xf32>
    %70 = vector.extract_strided_slice %6 {offsets = [0, 24], sizes = [16, 8], strides = [1, 1]} : vector<32x96xf32> to vector<16x8xf32>
    %71 = vector.extract_strided_slice %6 {offsets = [0, 56], sizes = [16, 8], strides = [1, 1]} : vector<32x96xf32> to vector<16x8xf32>
    %72 = vector.extract_strided_slice %6 {offsets = [0, 88], sizes = [16, 8], strides = [1, 1]} : vector<32x96xf32> to vector<16x8xf32>
    %cst_24 = arith.constant dense<0.000000e+00> : vector<16x16xf32>
    %73 = tpu.matmul %70, %71, %cst_24 {dimension_numbers = #tpu.dot_dimension_numbers<[1], [1], [0], [0], [0, 0, 1, 0], [], []>} : vector<16x8xf32>, vector<16x8xf32>, vector<16x16xf32> -> vector<16x16xf32>
    %74 = arith.addf %73, %12 : vector<16x16xf32>
    %cst_25 = arith.constant dense<0xFF800000> : vector<16xf32>
    %75 = vector.multi_reduction <maximumf>, %74, %cst_25 [1] : vector<16x16xf32> to vector<16xf32>
    %76 = vector.shape_cast %75 : vector<16xf32> to vector<16x1xf32>
    %77 = vector.broadcast %76 : vector<16x1xf32> to vector<16x16xf32>
    %78 = arith.subf %74, %77 : vector<16x16xf32>
    %79 = math.exp %78 : vector<16x16xf32>
    %cst_26 = arith.constant dense<0.000000e+00> : vector<16xf32>
    %80 = vector.multi_reduction <add>, %79, %cst_26 [1] : vector<16x16xf32> to vector<16xf32>
    %81 = vector.shape_cast %80 : vector<16xf32> to vector<16x1xf32>
    %82 = tpu.reciprocal %81 {approx = true} : vector<16x1xf32> -> vector<16x1xf32>
    %83 = vector.broadcast %82 : vector<16x1xf32> to vector<16x16xf32>
    %84 = arith.mulf %79, %83 : vector<16x16xf32>
    %cst_27 = arith.constant dense<0.000000e+00> : vector<16x8xf32>
    %85 = tpu.matmul %84, %72, %cst_27 {dimension_numbers = #tpu.dot_dimension_numbers<[1], [0], [0], [1], [0, 0, 1, 1], [], []>} : vector<16x16xf32>, vector<16x8xf32>, vector<16x8xf32> -> vector<16x8xf32>
    %86 = vector.extract_strided_slice %2 {offsets = [24, 0], sizes = [8, 32], strides = [1, 1]} : vector<32x32xf32> to vector<8x32xf32>
    %cst_28 = arith.constant dense<0.000000e+00> : vector<16x32xf32>
    %87 = tpu.matmul %85, %86, %cst_28 {dimension_numbers = #tpu.dot_dimension_numbers<[1], [0], [0], [1], [0, 0, 1, 1], [], []>} : vector<16x8xf32>, vector<8x32xf32>, vector<16x32xf32> -> vector<16x32xf32>
    %88 = arith.addf %69, %87 : vector<16x32xf32>
    %c0_29 = arith.constant 0 : index
    %c0_30 = arith.constant 0 : index
    %89 = vector.load %arg5[%c0_29, %c0_30] : memref<32x32xf32, #tpu.memory_space<vmem>>, vector<16x32xf32>
    tpu.vector_store %arg5[%c0_29, %c0_30], %88 {strides = array<i32>} : memref<32x32xf32, #tpu.memory_space<vmem>>, vector<16x32xf32>,
    %90 = vector.extract_strided_slice %6 {offsets = [16, 0], sizes = [16, 8], strides = [1, 1]} : vector<32x96xf32> to vector<16x8xf32>
    %91 = vector.extract_strided_slice %6 {offsets = [16, 32], sizes = [16, 8], strides = [1, 1]} : vector<32x96xf32> to vector<16x8xf32>
    %92 = vector.extract_strided_slice %6 {offsets = [16, 64], sizes = [16, 8], strides = [1, 1]} : vector<32x96xf32> to vector<16x8xf32>
    %cst_31 = arith.constant dense<0.000000e+00> : vector<16x16xf32>
    %93 = tpu.matmul %90, %91, %cst_31 {dimension_numbers = #tpu.dot_dimension_numbers<[1], [1], [0], [0], [0, 0, 1, 0], [], []>} : vector<16x8xf32>, vector<16x8xf32>, vector<16x16xf32> -> vector<16x16xf32>
    %94 = arith.addf %93, %12 : vector<16x16xf32>
    %cst_32 = arith.constant dense<0xFF800000> : vector<16xf32>
    %95 = vector.multi_reduction <maximumf>, %94, %cst_32 [1] : vector<16x16xf32> to vector<16xf32>
    %96 = vector.shape_cast %95 : vector<16xf32> to vector<16x1xf32>
    %97 = vector.broadcast %96 : vector<16x1xf32> to vector<16x16xf32>
    %98 = arith.subf %94, %97 : vector<16x16xf32>
    %99 = math.exp %98 : vector<16x16xf32>
    %cst_33 = arith.constant dense<0.000000e+00> : vector<16xf32>
    %100 = vector.multi_reduction <add>, %99, %cst_33 [1] : vector<16x16xf32> to vector<16xf32>
    %101 = vector.shape_cast %100 : vector<16xf32> to vector<16x1xf32>
    %102 = tpu.reciprocal %101 {approx = true} : vector<16x1xf32> -> vector<16x1xf32>
    %103 = vector.broadcast %102 : vector<16x1xf32> to vector<16x16xf32>
    %104 = arith.mulf %99, %103 : vector<16x16xf32>
    %cst_34 = arith.constant dense<0.000000e+00> : vector<16x8xf32>
    %105 = tpu.matmul %104, %92, %cst_34 {dimension_numbers = #tpu.dot_dimension_numbers<[1], [0], [0], [1], [0, 0, 1, 1], [], []>} : vector<16x16xf32>, vector<16x8xf32>, vector<16x8xf32> -> vector<16x8xf32>
    %106 = vector.extract_strided_slice %2 {offsets = [0, 0], sizes = [8, 32], strides = [1, 1]} : vector<32x32xf32> to vector<8x32xf32>
    %cst_35 = arith.constant dense<0.000000e+00> : vector<16x32xf32>
    %107 = tpu.matmul %105, %106, %cst_35 {dimension_numbers = #tpu.dot_dimension_numbers<[1], [0], [0], [1], [0, 0, 1, 1], [], []>} : vector<16x8xf32>, vector<8x32xf32>, vector<16x32xf32> -> vector<16x32xf32>
    %108 = arith.addf %5, %107 : vector<16x32xf32>
    %109 = vector.extract_strided_slice %6 {offsets = [16, 8], sizes = [16, 8], strides = [1, 1]} : vector<32x96xf32> to vector<16x8xf32>
    %110 = vector.extract_strided_slice %6 {offsets = [16, 40], sizes = [16, 8], strides = [1, 1]} : vector<32x96xf32> to vector<16x8xf32>
    %111 = vector.extract_strided_slice %6 {offsets = [16, 72], sizes = [16, 8], strides = [1, 1]} : vector<32x96xf32> to vector<16x8xf32>
    %cst_36 = arith.constant dense<0.000000e+00> : vector<16x16xf32>
    %112 = tpu.matmul %109, %110, %cst_36 {dimension_numbers = #tpu.dot_dimension_numbers<[1], [1], [0], [0], [0, 0, 1, 0], [], []>} : vector<16x8xf32>, vector<16x8xf32>, vector<16x16xf32> -> vector<16x16xf32>
    %113 = arith.addf %112, %12 : vector<16x16xf32>
    %cst_37 = arith.constant dense<0xFF800000> : vector<16xf32>
    %114 = vector.multi_reduction <maximumf>, %113, %cst_37 [1] : vector<16x16xf32> to vector<16xf32>
    %115 = vector.shape_cast %114 : vector<16xf32> to vector<16x1xf32>
    %116 = vector.broadcast %115 : vector<16x1xf32> to vector<16x16xf32>
    %117 = arith.subf %113, %116 : vector<16x16xf32>
    %118 = math.exp %117 : vector<16x16xf32>
    %cst_38 = arith.constant dense<0.000000e+00> : vector<16xf32>
    %119 = vector.multi_reduction <add>, %118, %cst_38 [1] : vector<16x16xf32> to vector<16xf32>
    %120 = vector.shape_cast %119 : vector<16xf32> to vector<16x1xf32>
    %121 = tpu.reciprocal %120 {approx = true} : vector<16x1xf32> -> vector<16x1xf32>
    %122 = vector.broadcast %121 : vector<16x1xf32> to vector<16x16xf32>
    %123 = arith.mulf %118, %122 : vector<16x16xf32>
    %cst_39 = arith.constant dense<0.000000e+00> : vector<16x8xf32>
    %124 = tpu.matmul %123, %111, %cst_39 {dimension_numbers = #tpu.dot_dimension_numbers<[1], [0], [0], [1], [0, 0, 1, 1], [], []>} : vector<16x16xf32>, vector<16x8xf32>, vector<16x8xf32> -> vector<16x8xf32>
    %125 = vector.extract_strided_slice %2 {offsets = [8, 0], sizes = [8, 32], strides = [1, 1]} : vector<32x32xf32> to vector<8x32xf32>
    %cst_40 = arith.constant dense<0.000000e+00> : vector<16x32xf32>
    %126 = tpu.matmul %124, %125, %cst_40 {dimension_numbers = #tpu.dot_dimension_numbers<[1], [0], [0], [1], [0, 0, 1, 1], [], []>} : vector<16x8xf32>, vector<8x32xf32>, vector<16x32xf32> -> vector<16x32xf32>
    %127 = arith.addf %108, %126 : vector<16x32xf32>
    %128 = vector.extract_strided_slice %6 {offsets = [16, 16], sizes = [16, 8], strides = [1, 1]} : vector<32x96xf32> to vector<16x8xf32>
    %129 = vector.extract_strided_slice %6 {offsets = [16, 48], sizes = [16, 8], strides = [1, 1]} : vector<32x96xf32> to vector<16x8xf32>
    %130 = vector.extract_strided_slice %6 {offsets = [16, 80], sizes = [16, 8], strides = [1, 1]} : vector<32x96xf32> to vector<16x8xf32>
    %cst_41 = arith.constant dense<0.000000e+00> : vector<16x16xf32>
    %131 = tpu.matmul %128, %129, %cst_41 {dimension_numbers = #tpu.dot_dimension_numbers<[1], [1], [0], [0], [0, 0, 1, 0], [], []>} : vector<16x8xf32>, vector<16x8xf32>, vector<16x16xf32> -> vector<16x16xf32>
    %132 = arith.addf %131, %12 : vector<16x16xf32>
    %cst_42 = arith.constant dense<0xFF800000> : vector<16xf32>
    %133 = vector.multi_reduction <maximumf>, %132, %cst_42 [1] : vector<16x16xf32> to vector<16xf32>
    %134 = vector.shape_cast %133 : vector<16xf32> to vector<16x1xf32>
    %135 = vector.broadcast %134 : vector<16x1xf32> to vector<16x16xf32>
    %136 = arith.subf %132, %135 : vector<16x16xf32>
    %137 = math.exp %136 : vector<16x16xf32>
    %cst_43 = arith.constant dense<0.000000e+00> : vector<16xf32>
    %138 = vector.multi_reduction <add>, %137, %cst_43 [1] : vector<16x16xf32> to vector<16xf32>
    %139 = vector.shape_cast %138 : vector<16xf32> to vector<16x1xf32>
    %140 = tpu.reciprocal %139 {approx = true} : vector<16x1xf32> -> vector<16x1xf32>
    %141 = vector.broadcast %140 : vector<16x1xf32> to vector<16x16xf32>
    %142 = arith.mulf %137, %141 : vector<16x16xf32>
    %cst_44 = arith.constant dense<0.000000e+00> : vector<16x8xf32>
    %143 = tpu.matmul %142, %130, %cst_44 {dimension_numbers = #tpu.dot_dimension_numbers<[1], [0], [0], [1], [0, 0, 1, 1], [], []>} : vector<16x16xf32>, vector<16x8xf32>, vector<16x8xf32> -> vector<16x8xf32>
    %144 = vector.extract_strided_slice %2 {offsets = [16, 0], sizes = [8, 32], strides = [1, 1]} : vector<32x32xf32> to vector<8x32xf32>
    %cst_45 = arith.constant dense<0.000000e+00> : vector<16x32xf32>
    %145 = tpu.matmul %143, %144, %cst_45 {dimension_numbers = #tpu.dot_dimension_numbers<[1], [0], [0], [1], [0, 0, 1, 1], [], []>} : vector<16x8xf32>, vector<8x32xf32>, vector<16x32xf32> -> vector<16x32xf32>
    %146 = arith.addf %127, %145 : vector<16x32xf32>
    %147 = vector.extract_strided_slice %6 {offsets = [16, 24], sizes = [16, 8], strides = [1, 1]} : vector<32x96xf32> to vector<16x8xf32>
    %148 = vector.extract_strided_slice %6 {offsets = [16, 56], sizes = [16, 8], strides = [1, 1]} : vector<32x96xf32> to vector<16x8xf32>
    %149 = vector.extract_strided_slice %6 {offsets = [16, 88], sizes = [16, 8], strides = [1, 1]} : vector<32x96xf32> to vector<16x8xf32>
    %cst_46 = arith.constant dense<0.000000e+00> : vector<16x16xf32>
    %150 = tpu.matmul %147, %148, %cst_46 {dimension_numbers = #tpu.dot_dimension_numbers<[1], [1], [0], [0], [0, 0, 1, 0], [], []>} : vector<16x8xf32>, vector<16x8xf32>, vector<16x16xf32> -> vector<16x16xf32>
    %151 = arith.addf %150, %12 : vector<16x16xf32>
    %cst_47 = arith.constant dense<0xFF800000> : vector<16xf32>
    %152 = vector.multi_reduction <maximumf>, %151, %cst_47 [1] : vector<16x16xf32> to vector<16xf32>
    %153 = vector.shape_cast %152 : vector<16xf32> to vector<16x1xf32>
    %154 = vector.broadcast %153 : vector<16x1xf32> to vector<16x16xf32>
    %155 = arith.subf %151, %154 : vector<16x16xf32>
    %156 = math.exp %155 : vector<16x16xf32>
    %cst_48 = arith.constant dense<0.000000e+00> : vector<16xf32>
    %157 = vector.multi_reduction <add>, %156, %cst_48 [1] : vector<16x16xf32> to vector<16xf32>
    %158 = vector.shape_cast %157 : vector<16xf32> to vector<16x1xf32>
    %159 = tpu.reciprocal %158 {approx = true} : vector<16x1xf32> -> vector<16x1xf32>
    %160 = vector.broadcast %159 : vector<16x1xf32> to vector<16x16xf32>
    %161 = arith.mulf %156, %160 : vector<16x16xf32>
    %cst_49 = arith.constant dense<0.000000e+00> : vector<16x8xf32>
    %162 = tpu.matmul %161, %149, %cst_49 {dimension_numbers = #tpu.dot_dimension_numbers<[1], [0], [0], [1], [0, 0, 1, 1], [], []>} : vector<16x16xf32>, vector<16x8xf32>, vector<16x8xf32> -> vector<16x8xf32>
    %163 = vector.extract_strided_slice %2 {offsets = [24, 0], sizes = [8, 32], strides = [1, 1]} : vector<32x32xf32> to vector<8x32xf32>
    %cst_50 = arith.constant dense<0.000000e+00> : vector<16x32xf32>
    %164 = tpu.matmul %162, %163, %cst_50 {dimension_numbers = #tpu.dot_dimension_numbers<[1], [0], [0], [1], [0, 0, 1, 1], [], []>} : vector<16x8xf32>, vector<8x32xf32>, vector<16x32xf32> -> vector<16x32xf32>
    %165 = arith.addf %146, %164 : vector<16x32xf32>
    %c16 = arith.constant 16 : index
    %c0_51 = arith.constant 0 : index
    %166 = vector.load %arg5[%c16, %c0_51] : memref<32x32xf32, #tpu.memory_space<vmem>>, vector<16x32xf32>
    tpu.vector_store %arg5[%c16, %c0_51], %165 {strides = array<i32>} : memref<32x32xf32, #tpu.memory_space<vmem>>, vector<16x32xf32>,
    return
  }
  func.func @transform_0(%arg0: i32) -> (i32, i32) {
    %c0_i32 = arith.constant 0 : i32
    %c0_i32_0 = arith.constant 0 : i32
    %c0_i32_1 = arith.constant 0 : i32
    return %c0_i32, %c0_i32_0 : i32, i32
  }
  func.func @transform_1(%arg0: i32) -> (i32, i32) {
    %c0_i32 = arith.constant 0 : i32
    %c0_i32_0 = arith.constant 0 : i32
    %c0_i32_1 = arith.constant 0 : i32
    return %c0_i32, %c0_i32_0 : i32, i32
  }
  func.func @transform_2(%arg0: i32) -> (i32, i32) {
    %c0_i32 = arith.constant 0 : i32
    %c0_i32_0 = arith.constant 0 : i32
    %c0_i32_1 = arith.constant 0 : i32
    return %c0_i32, %c0_i32_0 : i32, i32
  }
  func.func @transform_3(%arg0: i32) -> (i32, i32) {
    %c0_i32 = arith.constant 0 : i32
    %c0_i32_0 = arith.constant 0 : i32
    %c0_i32_1 = arith.constant 0 : i32
    return %c0_i32, %c0_i32_0 : i32, i32
  }
  func.func @transform_4(%arg0: i32) -> (i32, i32) {
    %c0_i32 = arith.constant 0 : i32
    %c0_i32_0 = arith.constant 0 : i32
    %c0_i32_1 = arith.constant 0 : i32
    return %c0_i32, %c0_i32_0 : i32, i32
  }
}

</mosaic_0001>

<bundles_post_ra>
// kernel: tpu_custom_call.1
= control target key start
LH: loop header
LB: loop body
LE: loop exit
PB: predicated region body
PF: predicated region fallthrough
CT: control target
= control target key end

     0   :  { %9 = vsyncpa [#allocation3], 0  ;;  %s3335_s0 = inlined_call_operand.hbm [shape: f32[32,32], index: 0, kind: input, shape index: {}]   ;;  %s3336_s1 = inlined_call_operand.hbm [shape: f32[32,96], index: 1, kind: input, shape index: {}]   ;;  %s3337_s2 = inlined_call_operand.hbm [shape: f32[32,32], index: 2, kind: input, shape index: {}]   ;;  %s3338_s3 = inlined_call_operand.vmem [shape: f32[1,32], index: 3, kind: input, shape index: {}]   ;;  %s3339_s4 = inlined_call_operand.hbm [shape: f32[32,32], index: 4, kind: output, shape index: {}]  }
   0x1   :  { %10 = vsyncpa [#allocation6], 0 }
   0x2   :  { %11 = vsyncpa [#allocation4], 0  ;;  %s2968_s15 = smov [#allocation5]   ;;  %s2969_s17 = smov [#allocation2]  }
   0x3   :  { %s29_s16 = sshll.u32 %s2968_s15, 4  ;;  %s17_s18 = sshll.u32 %s2969_s17, 4  ;;  %s30_s16 = int_to_ptr.vmem [resolvable:$true] %s29_s16  ;;  %s18_s18 = int_to_ptr.vmem [resolvable:$true] %s17_s18 }
   0x4   :  { %s2890_s19 = scalar_lea.vmem %s30_s16, 512  ;;  %p2895_p1 = scmp.lt.s32.totalorder %s30_s16, %s30_s16 }
   0x5   :  { %p2891_p0 = scmp.ne.s32.totalorder %s30_s16, %s2890_s19  ;;  %p2896_p2 = scmp.lt.s32.totalorder %s2890_s19, %s2890_s19 }
   0x7   :  { %p2897_p3 = por %p2896_p2, %p2895_p1 }
   0x9   :  { %p2898_p4 = pnand %p2897_p3, %p2891_p0 }
   0xb   :  { %2901 = shalt.err (!%p2898_p4)
}
   0xc   :  { %s2970_s20 = smov 128   ;;  %s2971_s21 = smov 8  }
   0xd   :  { %35 = dma.hbm_to_vmem [thread:$0]  %s3336_s1, 512, %s30_s16, [#allocation6], %s2970_s20, %s2970_s20, %s2971_s21  }
   0xe   :  { %s2910_s24 = scalar_lea.vmem %s18_s18, 512  ;;  %p2915_p6 = scmp.lt.s32.totalorder %s18_s18, %s18_s18 }
   0xf   :  { %p2911_p5 = scmp.ne.s32.totalorder %s18_s18, %s2910_s24  ;;  %p2916_p7 = scmp.lt.s32.totalorder %s2910_s24, %s2910_s24 }
  0x11   :  { %p2917_p8 = por %p2916_p7, %p2915_p6 }
  0x13   :  { %p2918_p9 = pnand %p2917_p8, %p2911_p5 }
  0x15   :  { %2921 = shalt.err (!%p2918_p9)
}
  0x16   :  { %23 = dma.hbm_to_vmem [thread:$0]  %s3335_s0, 512, %s18_s18, [#allocation3], %s2970_s20, %s2970_s20, %s2971_s21  }
  0x17   :  { %s2972_s27 = smov [#allocation7]  }
  0x18   :  { %s41_s28 = sshll.u32 %s2972_s27, 4  ;;  %s42_s28 = int_to_ptr.vmem [resolvable:$true] %s41_s28 }
  0x19   :  { %s2930_s29 = scalar_lea.vmem %s42_s28, 512  ;;  %p2935_p11 = scmp.lt.s32.totalorder %s42_s28, %s42_s28 }
  0x1a   :  { %p2931_p10 = scmp.ne.s32.totalorder %s42_s28, %s2930_s29  ;;  %p2936_p12 = scmp.lt.s32.totalorder %s2930_s29, %s2930_s29 }
  0x1c   :  { %p2937_p13 = por %p2936_p12, %p2935_p11 }
  0x1e   :  { %p2938_p0 = pnand %p2937_p13, %p2931_p10 }
  0x20   :  { %2941 = shalt.err (!%p2938_p0)
}
  0x21   :  { %47 = dma.hbm_to_vmem [thread:$0]  %s3337_s2, 512, %s42_s28, [#allocation6], %s2970_s20, %s2970_s20, %s2971_s21  }
  0x22   :  { %2962 = dma.done.wait [#allocation3], 512  }
  0x23   :  { %2963 = vsyncadd [#allocation3], 4294966784 }
  0x24   :  { %2964 = dma.done.wait [#allocation6], 1024  }
  0x25   :  { %2965 = vsyncadd [#allocation6], 4294966272  ;;  %vm78_vm0 = vcmask 261120   ;;  %v66_v0 = vld [vmem:[#allocation5 + $0x18] sm:$0xff]  ;;  %v65_v1 = vld [vmem:[#allocation5 + $0x10] sm:$0xff]  ;;  %vm191_vm1 = vcmask 64512   ;;  %v176_v10 = vlaneseq }
  0x26   :  { %2634 = vmatprep.subr.mxu0 %v66_v0  ;;  %v59_v2 = vld [vmem:[#allocation2] sm:$0xff]  ;;  %v64_v3 = vld [vmem:[#allocation5 + $0x8] sm:$0xff]  ;;  %s2973_s0 = smov 96   ;;  %v2974_v15 = vmov -1e+30   ;;  %vm275_vm4 = vcmask 130048  }
  0x27   :  { %2635 = vmatpush3.msra.mxu0 %v66_v0  ;;  %2642 = vmatprep.mubr.msk.f32.mxu0 %vm78_vm0, %v59_v2  ;;  %v63_v4 = vld [vmem:[#allocation5] sm:$0xff]  ;;  %v60_v5 = vld [vmem:[#allocation2 + $0x8] sm:$0xff]  ;;  %v177_v11 = vshrl.u32 %v176_v10, 7  ;;  %v180_v13 = vand.u32 127, %v176_v10  ;;  %s2975_s2 = smov 64   ;;  %s2976_s5 = smov 120  }
  0x28   :  { %2636 = vmatprep.subr.mxu0 %v65_v1  ;;  %s2977_s6 = smov 88   ;;  %s2978_s7 = smov 80   ;;  %v61_v33 = vld [vmem:[#allocation2 + $0x10] sm:$0xff]  ;;  %v62_v34 = vld [vmem:[#allocation2 + $0x18] sm:$0xff]  ;;  %v3093_v51 = vld [vmem:[#allocation7] sm:$0xff] }
  0x29   :  { %2637 = vmatpush3.msra.mxu0 %v65_v1  ;;  %v178_v12 = vadd.s32 8, %v177_v11  ;;  %vm181_vm2 = vcmp.le.s32.totalorder %v180_v13, %v177_v11  ;;  %s2979_s8 = smov 112   ;;  %s2980_s9 = smov 56  }
  0x2a   :  { %2638 = vmatprep.subr.mxu0 %v64_v3  ;;  %v3047_v16 = vsel %vm181_vm2, 0.0, %v2974_v15  ;;  %s2981_s10 = smov 72   ;;  %s2982_s11 = smov 104  }
  0x2b   :  { %2639 = vmatpush3.msra.mxu0 %v64_v3  ;;  %vm182_vm3 = vcmp.le.s32.totalorder %v180_v13, %v178_v12  ;;  %s2983_s12 = smov 48   ;;  %s2984_s13 = smov 40  }
  0x2c   :  { %2640 = vmatprep.subr.mxu0 %v63_v4  ;;  %v3049_v17 = vsel %vm182_vm3, 0.0, %v2974_v15 }
  0x2d   :  { %2641 = vmatpush3.msra.mxu0 %v63_v4 }
  0x2e   :  { %2643 = vmatmul.mubr.msk.f32.vlgmr.msra.gmra.mxu0 %vm78_vm0, %v60_v5  ;;  %2662 = vmatprep.subr.mxu0 %v3093_v51 }
  0x2f   :  { %2645 = vmatprep.mubr.msk.f32.mxu0 %vm78_vm0, %v61_v33  ;;  %2663 = vmatpush3.msra.mxu0 %v3093_v51 }
  0x32   :  { %2646 = vmatmul.mubr.msk.f32.gmra.mxu0 %vm78_vm0, %v62_v34 }
  0xee   :  { %v3031_v6 = vpop.f32.mrf.mxu0 }
  0xef   :  { %189 = vrot.lane.b32.xlu0 %v3031_v6, %s2973_s0 }
  0xf0   :  { %v3035_v7 = vpop.f32.mrf.mxu0 }
  0xf1   :  { %2652 = vmatprep.mubr.msk.f32.mxu1 %vm191_vm1, %v3035_v7 }
  0xf2   :  { %v3115_v63 = vpop.f32.mrf.mxu0 }
  0xf3   :  { %187 = vrot.lane.b32.xlu0 %v3035_v7, %s2973_s0 }
  0xf4   :  { %v3119_v0 = vpop.f32.mrf.mxu0 }
 0x161   :  { %v190_v8 = vpop.permute.xlu0 %189 }
 0x162   :  { %2648 = vmatprep.subr.msk.mxu1 %vm191_vm1, %v190_v8 }
 0x163   :  { %2649 = vmatpush3.xpose.msk.msra.mxu1 %vm191_vm1, %v190_v8 }
 0x165   :  { %v188_v9 = vpop.permute.xlu0 %187 }
 0x166   :  { %2650 = vmatprep.subr.msk.mxu1 %vm191_vm1, %v188_v9 }
 0x167   :  { %2651 = vmatpush3.xpose.msk.msra.mxu1 %vm191_vm1, %v188_v9 }
 0x16a   :  { %2653 = vmatmul.mubr.msk.f32.vlgmr.msra.gmra.mxu1 %vm191_vm1, %v3031_v6 }
 0x22a   :  { %v2654_v14 = vpop.f32.mrf.mxu1 }
 0x22b   :  { %v272_v20 = vadd.f32 %v2654_v14, %v3049_v17 }
 0x22c   :  { %v266_v18 = vpop.f32.mrf.mxu1 }
 0x22d   :  { %v267_v19 = vadd.f32 %v266_v18, %v3047_v16  ;;  %v279_v22 = vsel %vm275_vm4, %v272_v20, -inf }
 0x22f   :  { %v276_v21 = vsel %vm275_vm4, %v267_v19, -inf }
 0x230   :  { %277 = vmax.xlane.f32.xlu1 %v276_v21 }
 0x234   :  { %280 = vmax.xlane.f32.xlu1 %v279_v22 }
 0x2b9   :  { %v278_v23 = vpop.xlane.xlu1 %277 }
 0x2ba   :  { %v282_v24 = vsub.f32 %v267_v19, %v278_v23 }
 0x2bc   :  { %v284_v25 = vmul.f32 1.442695, %v282_v24 }
 0x2bd   :  { %v281_v26 = vpop.xlane.xlu1 %280 }
 0x2be   :  { %2818 = vpow2.f32 %v284_v25  ;;  %v283_v27 = vsub.f32 %v272_v20, %v281_v26 }
 0x2c0   :  { %v286_v28 = vmul.f32 1.442695, %v283_v27 }
 0x2c2   :  { %2820 = vpow2.f32 %v286_v28 }
 0x2cb   :  { %v2819_v29 = vpop.eup %2818 }
 0x2cc   :  { %v288_v30 = vsel %vm275_vm4, %v2819_v29, 0.0 }
 0x2cd   :  { %289 = vadd.xlane.f32.xlu0 %v288_v30 }
 0x2cf   :  { %v2821_v31 = vpop.eup %2820 }
 0x2d0   :  { %v291_v32 = vsel %vm275_vm4, %v2821_v31, 0.0 }
 0x2d1   :  { %292 = vadd.xlane.f32.xlu1 %v291_v32  ;;  %v3140_v32 = vld [vmem:[#allocation7 + $0x8] sm:$0xff] }
 0x2e2   :  { %300 = vrot.lane.b32.xlu1 %v3031_v6, %s2975_s2 }
 0x2e3   :  { %468 = vrot.lane.b32.xlu0 %v3035_v7, %s2976_s5 }
 0x2e6   :  { %298 = vrot.lane.b32.xlu1 %v3035_v7, %s2975_s2 }
 0x2ea   :  { %474 = vrot.lane.b32.xlu1 %v3031_v6, %s2977_s6 }
 0x2ee   :  { %472 = vrot.lane.b32.xlu1 %v3035_v7, %s2977_s6 }
 0x2f2   :  { %470 = vrot.lane.b32.xlu1 %v3031_v6, %s2976_s5 }
 0x2f6   :  { %757 = vrot.lane.b32.xlu1 %v3031_v6, %s2978_s7 }
 0x2fa   :  { %755 = vrot.lane.b32.xlu1 %v3035_v7, %s2978_s7 }
 0x2fe   :  { %751 = vrot.lane.b32.xlu1 %v3035_v7, %s2979_s8 }
 0x302   :  { %753 = vrot.lane.b32.xlu1 %v3031_v6, %s2979_s8 }
 0x356   :  { %v290_v35 = vpop.xlane.xlu0 %289 }
 0x357   :  { %2822 = vrcp.f32 %v290_v35 }
 0x35a   :  { %v293_v36 = vpop.xlane.xlu1 %292  ;;  %v469_v45 = vpop.permute.xlu0 %468 }
 0x35b   :  { %2824 = vrcp.f32 %v293_v36 }
 0x35e   :  { %v301_v37 = vpop.permute.xlu1 %300 }
 0x35f   :  { %2655 = vmatprep.subr.mxu1 %v301_v37 }
 0x360   :  { %2656 = vmatpush3.msra.mxu1 %v301_v37 }
 0x362   :  { %v299_v38 = vpop.permute.xlu1 %298 }
 0x363   :  { %2657 = vmatprep.subr.mxu1 %v299_v38 }
 0x364   :  { %v2823_v39 = vpop.eup %2822  ;;  %2658 = vmatpush3.msra.mxu1 %v299_v38 }
 0x365   :  { %v296_v40 = vmul.f32 %v2823_v39, %v2819_v29 }
 0x366   :  { %v475_v41 = vpop.permute.xlu1 %474 }
 0x367   :  { %2659 = vmatprep.mubr.msk.f32.mxu1 %vm275_vm4, %v296_v40  ;;  %2667 = vmatprep.subr.msk.mxu1 %vm191_vm1, %v475_v41 }
 0x368   :  { %v2825_v42 = vpop.eup %2824 }
 0x369   :  { %v297_v43 = vmul.f32 %v2825_v42, %v2821_v31 }
 0x36a   :  { %v473_v44 = vpop.permute.xlu1 %472 }
 0x36b   :  { %2660 = vmatmul.mubr.msk.f32.vlgmr.msra.gmra.mxu1 %vm275_vm4, %v297_v43 }
 0x36c   :  { %2668 = vmatpush3.xpose.msk.msra.mxu1 %vm191_vm1, %v475_v41  ;;  %2671 = vmatprep.mubr.msk.f32.mxu1 %vm191_vm1, %v469_v45 }
 0x36d   :  { %2669 = vmatprep.subr.msk.mxu1 %vm191_vm1, %v473_v44 }
 0x36e   :  { %v471_v46 = vpop.permute.xlu1 %470 }
 0x370   :  { %2670 = vmatpush3.xpose.msk.msra.mxu1 %vm191_vm1, %v473_v44 }
 0x372   :  { %v758_v47 = vpop.permute.xlu1 %757 }
 0x373   :  { %2672 = vmatmul.mubr.msk.f32.vlgmr.msra.gmra.mxu1 %vm191_vm1, %v471_v46  ;;  %2686 = vmatprep.subr.msk.mxu1 %vm191_vm1, %v758_v47 }
 0x374   :  { %2687 = vmatpush3.xpose.msk.msra.mxu1 %vm191_vm1, %v758_v47 }
 0x376   :  { %v756_v48 = vpop.permute.xlu1 %755 }
 0x377   :  { %2688 = vmatprep.subr.msk.mxu1 %vm191_vm1, %v756_v48 }
 0x378   :  { %2689 = vmatpush3.xpose.msk.msra.mxu1 %vm191_vm1, %v756_v48 }
 0x37a   :  { %v752_v49 = vpop.permute.xlu1 %751 }
 0x37b   :  { %2690 = vmatprep.mubr.msk.f32.mxu1 %vm191_vm1, %v752_v49 }
 0x37e   :  { %v754_v50 = vpop.permute.xlu1 %753 }
 0x37f   :  { %2691 = vmatmul.mubr.msk.f32.vlgmr.msra.gmra.mxu1 %vm191_vm1, %v754_v50 }
 0x42b   :  { %v2661_v52 = vpop.f32.mrf.mxu1 }
 0x42d   :  { %v376_v53 = vpop.f32.mrf.mxu1 }
 0x42e   :  { %2664 = vmatprep.mubr.msk.f32.mxu0 %vm191_vm1, %v376_v53 }
 0x42f   :  { %2665 = vmatmul.mubr.msk.f32.vlgmr.msra.gmra.mxu0 %vm191_vm1, %v2661_v52 }
 0x433   :  { %v2673_v54 = vpop.f32.mrf.mxu1 }
 0x434   :  { %v556_v55 = vadd.f32 %v2673_v54, %v3049_v17 }
 0x435   :  { %v550_v56 = vpop.f32.mrf.mxu1 }
 0x436   :  { %v551_v57 = vadd.f32 %v550_v56, %v3047_v16  ;;  %v562_v58 = vsel %vm275_vm4, %v556_v55, -inf }
 0x437   :  { %563 = vmax.xlane.f32.xlu1 %v562_v58  ;;  %v3168_v58 = vld [vmem:[#allocation7 + $0x10] sm:$0xff] }
 0x438   :  { %v559_v59 = vsel %vm275_vm4, %v551_v57, -inf }
 0x439   :  { %560 = vmax.xlane.f32.xlu0 %v559_v59 }
 0x43f   :  { %v2692_v60 = vpop.f32.mrf.mxu1 }
 0x440   :  { %v839_v61 = vadd.f32 %v2692_v60, %v3049_v17 }
 0x441   :  { %v833_v22 = vpop.f32.mrf.mxu1 }
 0x442   :  { %v845_v62 = vsel %vm275_vm4, %v839_v61, -inf  ;;  %v834_v23 = vadd.f32 %v833_v22, %v3047_v16 }
 0x444   :  { %v842_v24 = vsel %vm275_vm4, %v834_v23, -inf }
 0x448   :  { %583 = vrot.lane.b32.xlu1 %v3031_v6, %s2980_s9 }
 0x44c   :  { %1040 = vrot.lane.b32.xlu1 %v3031_v6, %s2981_s10 }
 0x450   :  { %1038 = vrot.lane.b32.xlu1 %v3035_v7, %s2981_s10 }
 0x454   :  { %1036 = vrot.lane.b32.xlu1 %v3031_v6, %s2982_s11 }
 0x478   :  { %846 = vmax.xlane.f32.xlu1 %v845_v62 }
 0x489   :  { %866 = vrot.lane.b32.xlu1 %v3031_v6, %s2983_s12 }
 0x48d   :  { %1323 = vrot.lane.b32.xlu1 %v3115_v63, %s2973_s0 }
 0x491   :  { %1321 = vrot.lane.b32.xlu1 %v3119_v0, %s2973_s0 }
 0x4c0   :  { %v564_v1 = vpop.xlane.xlu1 %563 }
 0x4c1   :  { %v566_v2 = vsub.f32 %v556_v55, %v564_v1 }
 0x4c2   :  { %v561_v3 = vpop.xlane.xlu0 %560 }
 0x4c3   :  { %v569_v4 = vmul.f32 1.442695, %v566_v2  ;;  %v565_v5 = vsub.f32 %v551_v57, %v561_v3 }
 0x4c4   :  { %v584_v8 = vpop.permute.xlu1 %583 }
 0x4c5   :  { %2826 = vpow2.f32 %v569_v4  ;;  %v567_v9 = vmul.f32 1.442695, %v565_v5  ;;  %2674 = vmatprep.subr.mxu0 %v584_v8 }
 0x4c6   :  { %2675 = vmatpush3.msra.mxu0 %v584_v8 }
 0x4c7   :  { %2828 = vpow2.f32 %v567_v9 }
 0x4c8   :  { %v1041_v10 = vpop.permute.xlu1 %1040 }
 0x4c9   :  { %2705 = vmatprep.subr.msk.mxu1 %vm191_vm1, %v1041_v10 }
 0x4ca   :  { %2706 = vmatpush3.xpose.msk.msra.mxu1 %vm191_vm1, %v1041_v10 }
 0x4cc   :  { %v1039_v11 = vpop.permute.xlu1 %1038 }
 0x4cd   :  { %2707 = vmatprep.subr.msk.mxu1 %vm191_vm1, %v1039_v11 }
 0x4ce   :  { %2708 = vmatpush3.xpose.msk.msra.mxu1 %vm191_vm1, %v1039_v11 }
 0x4d0   :  { %v1037_v18 = vpop.permute.xlu1 %1036 }
 0x4d2   :  { %v2827_v12 = vpop.eup %2826 }
 0x4d3   :  { %v574_v13 = vsel %vm275_vm4, %v2827_v12, 0.0 }
 0x4d4   :  { %v2829_v14 = vpop.eup %2828  ;;  %575 = vadd.xlane.f32.xlu0 %v574_v13 }
 0x4d5   :  { %v571_v15 = vsel %vm275_vm4, %v2829_v14, 0.0 }
 0x4d8   :  { %572 = vadd.xlane.f32.xlu0 %v571_v15 }
 0x4ee   :  { %581 = vrot.lane.b32.xlu0 %v3035_v7, %s2980_s9 }
 0x4ef   :  { %v3159_v46 = vpop.f32.mrf.mxu0 }
 0x4f1   :  { %v3164_v52 = vpop.f32.mrf.mxu0 }
 0x4f2   :  { %1034 = vrot.lane.b32.xlu0 %v3035_v7, %s2982_s11 }
 0x501   :  { %v847_v19 = vpop.xlane.xlu1 %846 }
 0x502   :  { %v849_v20 = vsub.f32 %v839_v61, %v847_v19 }
 0x504   :  { %v852_v21 = vmul.f32 1.442695, %v849_v20  ;;  %v3206_v20 = vld [vmem:[%s3338_s3] ss:$0 sm:$0xff]  ;;  %s2985_s3 = smov [#allocation8]  }
 0x505   :  { %v867_v27 = vpop.permute.xlu1 %866  ;;  %v467_v22 = vadd.f32 %v3159_v46, %v3206_v20  ;;  %s2456_s16 = sshll.u32 %s2985_s3, 4  ;;  %s2457_s16 = int_to_ptr.vmem [resolvable:$true] %s2456_s16 }
 0x506   :  { %2830 = vpow2.f32 %v852_v21  ;;  %s2942_s17 = scalar_lea.vmem %s2457_s16, 512  ;;  %p2947_p2 = scmp.lt.s32.totalorder %s2457_s16, %s2457_s16 }
 0x507   :  { %p2943_p1 = scmp.ne.s32.totalorder %s2457_s16, %s2942_s17  ;;  %p2948_p3 = scmp.lt.s32.totalorder %s2942_s17, %s2942_s17 }
 0x509   :  { %v1324_v28 = vpop.permute.xlu1 %1323  ;;  %p2949_p4 = por %p2948_p3, %p2947_p2 }
 0x50a   :  { %2724 = vmatprep.subr.msk.mxu1 %vm191_vm1, %v1324_v28 }
 0x50b   :  { %p2950_p5 = pnand %p2949_p4, %p2943_p1 }
 0x50d   :  { %v1322_v34 = vpop.permute.xlu1 %1321 }
 0x511   :  { %843 = vmax.xlane.f32.xlu0 %v842_v24 }
 0x513   :  { %v3135_v25 = vpop.eup %2830 }
 0x514   :  { %v857_v26 = vsel %vm275_vm4, %v3135_v25, 0.0 }
 0x515   :  { %858 = vadd.xlane.f32.xlu0 %v857_v26 }
 0x55d   :  { %v576_v29 = vpop.xlane.xlu0 %575 }
 0x55e   :  { %2832 = vrcp.f32 %v576_v29 }
 0x561   :  { %v573_v30 = vpop.xlane.xlu0 %572 }
 0x562   :  { %2834 = vrcp.f32 %v573_v30 }
 0x565   :  { %v582_v31 = vpop.permute.xlu0 %581 }
 0x566   :  { %2676 = vmatprep.subr.mxu0 %v582_v31 }
 0x567   :  { %2677 = vmatpush3.msra.mxu0 %v582_v31 }
 0x568   :  { %2681 = vmatprep.subr.mxu0 %v3140_v32 }
 0x569   :  { %v1035_v33 = vpop.permute.xlu0 %1034 }
 0x56a   :  { %2709 = vmatprep.mubr.msk.f32.mxu1 %vm191_vm1, %v1035_v33 }
 0x56b   :  { %2710 = vmatmul.mubr.msk.f32.vlgmr.msra.gmra.mxu1 %vm191_vm1, %v1037_v18  ;;  %v2833_v35 = vpop.eup %2832 }
 0x56c   :  { %2725 = vmatpush3.xpose.msk.msra.mxu1 %vm191_vm1, %v1324_v28  ;;  %2728 = vmatprep.mubr.msk.f32.mxu1 %vm191_vm1, %v3119_v0  ;;  %v580_v38 = vmul.f32 %v2833_v35, %v2827_v12 }
 0x56d   :  { %2726 = vmatprep.subr.msk.mxu1 %vm191_vm1, %v1322_v34 }
 0x56f   :  { %v2835_v36 = vpop.eup %2834 }
 0x570   :  { %v579_v37 = vmul.f32 %v2835_v36, %v2829_v14  ;;  %2727 = vmatpush3.xpose.msk.msra.mxu1 %vm191_vm1, %v1322_v34 }
 0x572   :  { %2678 = vmatprep.mubr.msk.f32.mxu0 %vm275_vm4, %v579_v37 }
 0x573   :  { %2679 = vmatmul.mubr.msk.f32.vlgmr.msra.gmra.mxu0 %vm275_vm4, %v580_v38  ;;  %2729 = vmatmul.mubr.msk.f32.vlgmr.msra.gmra.mxu1 %vm191_vm1, %v3115_v63 }
 0x574   :  { %2682 = vmatpush3.msra.mxu0 %v3140_v32 }
 0x575   :  { %2693 = vmatprep.subr.mxu0 %v867_v27 }
 0x59a   :  { %v844_v39 = vpop.xlane.xlu0 %843 }
 0x59b   :  { %v848_v40 = vsub.f32 %v834_v23, %v844_v39 }
 0x59d   :  { %v850_v41 = vmul.f32 1.442695, %v848_v40 }
 0x59e   :  { %v859_v53 = vpop.xlane.xlu0 %858 }
 0x59f   :  { %2836 = vpow2.f32 %v850_v41  ;;  %v3223_v41 = vld [vmem:[#allocation7 + $0x18] sm:$0xff] }
 0x5a0   :  { %2838 = vrcp.f32 %v859_v53 }
 0x5ac   :  { %v2837_v42 = vpop.eup %2836 }
 0x5ad   :  { %v854_v43 = vsel %vm275_vm4, %v2837_v42, 0.0  ;;  %v2839_v59 = vpop.eup %2838 }
 0x5ae   :  { %855 = vadd.xlane.f32.xlu0 %v854_v43  ;;  %v863_v62 = vmul.f32 %v2839_v59, %v3135_v25 }
 0x5c4   :  { %864 = vrot.lane.b32.xlu0 %v3035_v7, %s2983_s12 }
 0x62b   :  { %v2711_v44 = vpop.f32.mrf.mxu1 }
 0x62c   :  { %v1122_v45 = vadd.f32 %v2711_v44, %v3049_v17 }
 0x62d   :  { %v1116_v47 = vpop.f32.mrf.mxu1 }
 0x62e   :  { %v1117_v48 = vadd.f32 %v1116_v47, %v3047_v16  ;;  %v1128_v49 = vsel %vm275_vm4, %v1122_v45, -inf }
 0x62f   :  { %1129 = vmax.xlane.f32.xlu1 %v1128_v49 }
 0x630   :  { %v1125_v50 = vsel %vm275_vm4, %v1117_v48, -inf }
 0x631   :  { %1126 = vmax.xlane.f32.xlu0 %v1125_v50 }
 0x633   :  { %v2680_v54 = vpop.f32.mrf.mxu0 }
 0x635   :  { %v659_v55 = vpop.f32.mrf.mxu0 }
 0x636   :  { %2683 = vmatprep.mubr.msk.f32.mxu0 %vm191_vm1, %v659_v55 }
 0x637   :  { %v856_v56 = vpop.xlane.xlu0 %855  ;;  %2684 = vmatmul.mubr.msk.f32.vlgmr.msra.gmra.mxu0 %vm191_vm1, %v2680_v54 }
 0x638   :  { %2840 = vrcp.f32 %v856_v56  ;;  %2694 = vmatpush3.msra.mxu0 %v867_v27 }
 0x63b   :  { %v865_v57 = vpop.permute.xlu0 %864 }
 0x63c   :  { %2695 = vmatprep.subr.mxu0 %v865_v57 }
 0x63d   :  { %2696 = vmatpush3.msra.mxu0 %v865_v57 }
 0x63e   :  { %2700 = vmatprep.subr.mxu0 %v3168_v58 }
 0x640   :  { %1149 = vrot.lane.b32.xlu1 %v3031_v6, %s2984_s13  ;;  %v2730_v6 = vpop.f32.mrf.mxu1 }
 0x641   :  { %v1405_v1 = vadd.f32 %v2730_v6, %v3049_v17 }
 0x643   :  { %v1411_v2 = vsel %vm275_vm4, %v1405_v1, -inf }
 0x644   :  { %1606 = vrot.lane.b32.xlu1 %v3115_v63, %s2977_s6 }
 0x645   :  { %v2841_v60 = vpop.eup %2840 }
 0x646   :  { %v862_v61 = vmul.f32 %v2841_v60, %v2837_v42 }
 0x648   :  { %1604 = vrot.lane.b32.xlu1 %v3119_v0, %s2977_s6  ;;  %2697 = vmatprep.mubr.msk.f32.mxu0 %vm275_vm4, %v862_v61 }
 0x649   :  { %2698 = vmatmul.mubr.msk.f32.vlgmr.msra.gmra.mxu0 %vm275_vm4, %v863_v62 }
 0x64a   :  { %2701 = vmatpush3.msra.mxu0 %v3168_v58 }
 0x64c   :  { %1602 = vrot.lane.b32.xlu1 %v3115_v63, %s2976_s5 }
 0x670   :  { %1412 = vmax.xlane.f32.xlu1 %v1411_v2 }
 0x681   :  { %1432 = vrot.lane.b32.xlu1 %v3115_v63, %s2975_s2 }
 0x685   :  { %1889 = vrot.lane.b32.xlu1 %v3115_v63, %s2978_s7 }
 0x689   :  { %1887 = vrot.lane.b32.xlu1 %v3119_v0, %s2978_s7 }
 0x68d   :  { %1885 = vrot.lane.b32.xlu1 %v3115_v63, %s2979_s8 }
 0x6b8   :  { %v1130_v3 = vpop.xlane.xlu1 %1129 }
 0x6b9   :  { %v1132_v4 = vsub.f32 %v1122_v45, %v1130_v3 }
 0x6ba   :  { %v1127_v5 = vpop.xlane.xlu0 %1126 }
 0x6bb   :  { %v1135_v8 = vmul.f32 1.442695, %v1132_v4  ;;  %v1131_v9 = vsub.f32 %v1117_v48, %v1127_v5 }
 0x6bc   :  { %v1150_v10 = vpop.permute.xlu1 %1149 }
 0x6bd   :  { %2842 = vpow2.f32 %v1135_v8  ;;  %v1133_v11 = vmul.f32 1.442695, %v1131_v9  ;;  %2712 = vmatprep.subr.mxu0 %v1150_v10 }
 0x6bf   :  { %2844 = vpow2.f32 %v1133_v11 }
 0x6c0   :  { %v1607_v12 = vpop.permute.xlu1 %1606 }
 0x6c1   :  { %2743 = vmatprep.subr.msk.mxu1 %vm191_vm1, %v1607_v12 }
 0x6c2   :  { %2744 = vmatpush3.xpose.msk.msra.mxu1 %vm191_vm1, %v1607_v12 }
 0x6c4   :  { %v1605_v13 = vpop.permute.xlu1 %1604 }
 0x6c5   :  { %2745 = vmatprep.subr.msk.mxu1 %vm191_vm1, %v1605_v13 }
 0x6c6   :  { %2746 = vmatpush3.xpose.msk.msra.mxu1 %vm191_vm1, %v1605_v13 }
 0x6c8   :  { %v1603_v21 = vpop.permute.xlu1 %1602 }
 0x6ca   :  { %v2843_v14 = vpop.eup %2842 }
 0x6cb   :  { %v1140_v15 = vsel %vm275_vm4, %v2843_v14, 0.0 }
 0x6cc   :  { %v2845_v18 = vpop.eup %2844  ;;  %1141 = vadd.xlane.f32.xlu0 %v1140_v15 }
 0x6cd   :  { %v1137_v19 = vsel %vm275_vm4, %v2845_v18, 0.0 }
 0x6d0   :  { %1138 = vadd.xlane.f32.xlu0 %v1137_v19 }
 0x6e6   :  { %1147 = vrot.lane.b32.xlu0 %v3035_v7, %s2984_s13  ;;  %v1399_v7 = vpop.f32.mrf.mxu1 }
 0x6e7   :  { %v1400_v30 = vadd.f32 %v1399_v7, %v3047_v16 }
 0x6e9   :  { %v1408_v33 = vsel %vm275_vm4, %v1400_v30, -inf }
 0x6ea   :  { %1600 = vrot.lane.b32.xlu0 %v3119_v0, %s2976_s5 }
 0x6f7   :  { %v2685_v23 = vpop.f32.mrf.mxu0 }
 0x6f8   :  { %v750_v24 = vadd.f32 %v2685_v23, %v467_v22 }
 0x6f9   :  { %v1413_v25 = vpop.xlane.xlu1 %1412  ;;  %v3214_v31 = vpop.f32.mrf.mxu0 }
 0x6fa   :  { %v1415_v26 = vsub.f32 %v1405_v1, %v1413_v25 }
 0x6fc   :  { %v1418_v27 = vmul.f32 1.442695, %v1415_v26 }
 0x6fd   :  { %v3210_v28 = vpop.permute.xlu1 %1432 }
 0x6fe   :  { %2846 = vpow2.f32 %v1418_v27 }
 0x701   :  { %v1890_v29 = vpop.permute.xlu1 %1889 }
 0x702   :  { %2762 = vmatprep.subr.msk.mxu1 %vm191_vm1, %v1890_v29 }
 0x705   :  { %v1888_v43 = vpop.permute.xlu1 %1887 }
 0x709   :  { %1409 = vmax.xlane.f32.xlu0 %v1408_v33  ;;  %v2699_v34 = vpop.f32.mrf.mxu0 }
 0x70b   :  { %v3217_v35 = vpop.eup %2846  ;;  %v942_v36 = vpop.f32.mrf.mxu0 }
 0x70c   :  { %2702 = vmatprep.mubr.msk.f32.mxu0 %vm191_vm1, %v942_v36  ;;  %v1423_v37 = vsel %vm275_vm4, %v3217_v35, 0.0 }
 0x70d   :  { %1424 = vadd.xlane.f32.xlu0 %v1423_v37  ;;  %2703 = vmatmul.mubr.msk.f32.vlgmr.msra.gmra.mxu0 %vm191_vm1, %v2699_v34 }
 0x70e   :  { %2713 = vmatpush3.msra.mxu0 %v1150_v10  ;;  %v1886_v10 = vpop.permute.xlu1 %1885 }
 0x755   :  { %v1142_v38 = vpop.xlane.xlu0 %1141 }
 0x756   :  { %2848 = vrcp.f32 %v1142_v38 }
 0x759   :  { %v1139_v39 = vpop.xlane.xlu0 %1138 }
 0x75a   :  { %2850 = vrcp.f32 %v1139_v39 }
 0x75d   :  { %v1148_v40 = vpop.permute.xlu0 %1147 }
 0x75e   :  { %2714 = vmatprep.subr.mxu0 %v1148_v40 }
 0x75f   :  { %2715 = vmatpush3.msra.mxu0 %v1148_v40 }
 0x760   :  { %2719 = vmatprep.subr.mxu0 %v3223_v41 }
 0x761   :  { %v1601_v42 = vpop.permute.xlu0 %1600 }
 0x762   :  { %2747 = vmatprep.mubr.msk.f32.mxu1 %vm191_vm1, %v1601_v42 }
 0x763   :  { %2748 = vmatmul.mubr.msk.f32.vlgmr.msra.gmra.mxu1 %vm191_vm1, %v1603_v21  ;;  %v2849_v44 = vpop.eup %2848 }
 0x764   :  { %2763 = vmatpush3.xpose.msk.msra.mxu1 %vm191_vm1, %v1890_v29  ;;  %v1146_v47 = vmul.f32 %v2849_v44, %v2843_v14  ;;  %v466_v29 = vadd.f32 %v3206_v20, %v3164_v52 }
 0x765   :  { %2764 = vmatprep.subr.msk.mxu1 %vm191_vm1, %v1888_v43 }
 0x767   :  { %v2851_v45 = vpop.eup %2850 }
 0x768   :  { %2765 = vmatpush3.xpose.msk.msra.mxu1 %vm191_vm1, %v1888_v43  ;;  %v1145_v46 = vmul.f32 %v2851_v45, %v2845_v18 }
 0x76a   :  { %2716 = vmatprep.mubr.msk.f32.mxu0 %vm275_vm4, %v1145_v46 }
 0x76b   :  { %2717 = vmatmul.mubr.msk.f32.vlgmr.msra.gmra.mxu0 %vm275_vm4, %v1146_v47 }
 0x76c   :  { %2720 = vmatpush3.msra.mxu0 %v3223_v41 }
 0x76d   :  { %2731 = vmatprep.subr.mxu0 %v3210_v28 }
 0x792   :  { %v1410_v48 = vpop.xlane.xlu0 %1409 }
 0x793   :  { %v1414_v49 = vsub.f32 %v1400_v30, %v1410_v48  ;;  %v749_v30 = vadd.f32 %v3214_v31, %v466_v29 }
 0x795   :  { %v1416_v50 = vmul.f32 1.442695, %v1414_v49 }
 0x796   :  { %v1425_v2 = vpop.xlane.xlu0 %1424 }
 0x797   :  { %2852 = vpow2.f32 %v1416_v50 }
 0x798   :  { %2854 = vrcp.f32 %v1425_v2 }
 0x7a4   :  { %v2853_v53 = vpop.eup %2852 }
 0x7a5   :  { %v1420_v54 = vsel %vm275_vm4, %v2853_v53, 0.0  ;;  %v2855_v11 = vpop.eup %2854 }
 0x7a6   :  { %1421 = vadd.xlane.f32.xlu0 %v1420_v54  ;;  %v1429_v14 = vmul.f32 %v2855_v11, %v3217_v35 }
 0x7bc   :  { %1430 = vrot.lane.b32.xlu0 %v3119_v0, %s2975_s2 }
 0x7c0   :  { %1883 = vrot.lane.b32.xlu0 %v3119_v0, %s2979_s8 }
 0x7cd   :  { %v2704_v55 = vpop.f32.mrf.mxu0 }
 0x7ce   :  { %v3240_v56 = vadd.f32 %v2704_v55, %v750_v24 }
 0x7cf   :  { %v1023_v1 = vpop.f32.mrf.mxu0 }
 0x7d0   :  { %v1032_v34 = vadd.f32 %v1023_v1, %v749_v30 }
 0x823   :  { %v2749_v57 = vpop.f32.mrf.mxu1 }
 0x824   :  { %v1688_v59 = vadd.f32 %v2749_v57, %v3049_v17 }
 0x825   :  { %v1682_v60 = vpop.f32.mrf.mxu1 }
 0x826   :  { %v1683_v61 = vadd.f32 %v1682_v60, %v3047_v16  ;;  %v1694_v62 = vsel %vm275_vm4, %v1688_v59, -inf }
 0x827   :  { %1695 = vmax.xlane.f32.xlu1 %v1694_v62 }
 0x828   :  { %v1691_v6 = vsel %vm275_vm4, %v1683_v61, -inf }
 0x829   :  { %1692 = vmax.xlane.f32.xlu0 %v1691_v6 }
 0x82b   :  { %v2718_v3 = vpop.f32.mrf.mxu0 }
 0x82d   :  { %v1225_v4 = vpop.f32.mrf.mxu0 }
 0x82e   :  { %2721 = vmatprep.mubr.msk.f32.mxu0 %vm191_vm1, %v1225_v4 }
 0x82f   :  { %v1422_v5 = vpop.xlane.xlu0 %1421  ;;  %2722 = vmatmul.mubr.msk.f32.vlgmr.msra.gmra.mxu0 %vm191_vm1, %v2718_v3 }
 0x830   :  { %2856 = vrcp.f32 %v1422_v5  ;;  %2732 = vmatpush3.msra.mxu0 %v3210_v28 }
 0x833   :  { %v1431_v8 = vpop.permute.xlu0 %1430 }
 0x834   :  { %2733 = vmatprep.subr.mxu0 %v1431_v8 }
 0x835   :  { %2734 = vmatpush3.msra.mxu0 %v1431_v8 }
 0x836   :  { %2738 = vmatprep.subr.mxu0 %v3093_v51 }
 0x837   :  { %v1884_v9 = vpop.permute.xlu0 %1883 }
 0x838   :  { %1715 = vrot.lane.b32.xlu1 %v3115_v63, %s2980_s9  ;;  %2766 = vmatprep.mubr.msk.f32.mxu1 %vm191_vm1, %v1884_v9 }
 0x839   :  { %2767 = vmatmul.mubr.msk.f32.vlgmr.msra.gmra.mxu1 %vm191_vm1, %v1886_v10 }
 0x83c   :  { %2172 = vrot.lane.b32.xlu1 %v3115_v63, %s2981_s10 }
 0x83d   :  { %v2857_v12 = vpop.eup %2856 }
 0x83e   :  { %v1428_v13 = vmul.f32 %v2857_v12, %v2853_v53 }
 0x840   :  { %2170 = vrot.lane.b32.xlu1 %v3119_v0, %s2981_s10  ;;  %2735 = vmatprep.mubr.msk.f32.mxu0 %vm275_vm4, %v1428_v13 }
 0x841   :  { %2736 = vmatmul.mubr.msk.f32.vlgmr.msra.gmra.mxu0 %vm275_vm4, %v1429_v14 }
 0x842   :  { %2739 = vmatpush3.msra.mxu0 %v3093_v51 }
 0x844   :  { %2168 = vrot.lane.b32.xlu1 %v3115_v63, %s2982_s11 }
 0x8b0   :  { %v1696_v15 = vpop.xlane.xlu1 %1695 }
 0x8b1   :  { %v1698_v18 = vsub.f32 %v1688_v59, %v1696_v15 }
 0x8b2   :  { %v1693_v19 = vpop.xlane.xlu0 %1692 }
 0x8b3   :  { %v1701_v21 = vmul.f32 1.442695, %v1698_v18  ;;  %v1697_v22 = vsub.f32 %v1683_v61, %v1693_v19 }
 0x8b4   :  { %v1716_v23 = vpop.permute.xlu1 %1715 }
 0x8b5   :  { %2858 = vpow2.f32 %v1701_v21  ;;  %v1699_v24 = vmul.f32 1.442695, %v1697_v22  ;;  %2750 = vmatprep.subr.mxu0 %v1716_v23 }
 0x8b7   :  { %2860 = vpow2.f32 %v1699_v24 }
 0x8b8   :  { %v2173_v25 = vpop.permute.xlu1 %2172 }
 0x8b9   :  { %2781 = vmatprep.subr.msk.mxu1 %vm191_vm1, %v2173_v25 }
 0x8ba   :  { %2782 = vmatpush3.xpose.msk.msra.mxu1 %vm191_vm1, %v2173_v25 }
 0x8bc   :  { %v2171_v26 = vpop.permute.xlu1 %2170 }
 0x8bd   :  { %2783 = vmatprep.subr.msk.mxu1 %vm191_vm1, %v2171_v26 }
 0x8be   :  { %2784 = vmatpush3.xpose.msk.msra.mxu1 %vm191_vm1, %v2171_v26 }
 0x8c0   :  { %v2169_v49 = vpop.permute.xlu1 %2168 }
 0x8c2   :  { %v2859_v51 = vpop.eup %2858 }
 0x8c3   :  { %v1706_v27 = vsel %vm275_vm4, %v2859_v51, 0.0 }
 0x8c4   :  { %v2861_v28 = vpop.eup %2860  ;;  %1707 = vadd.xlane.f32.xlu0 %v1706_v27 }
 0x8c5   :  { %v1703_v7 = vsel %vm275_vm4, %v2861_v28, 0.0 }
 0x8c8   :  { %1704 = vadd.xlane.f32.xlu0 %v1703_v7 }
 0x8de   :  { %1713 = vrot.lane.b32.xlu0 %v3119_v0, %s2980_s9 }
 0x8e2   :  { %2166 = vrot.lane.b32.xlu0 %v3119_v0, %s2982_s11 }
 0x8ef   :  { %v2723_v33 = vpop.f32.mrf.mxu0 }
 0x8f0   :  { %v1316_v35 = vadd.f32 %v2723_v33, %v3240_v56 }
 0x8f1   :  { %v1306_v36 = vpop.f32.mrf.mxu0 }
 0x8f2   :  { %1318 = vst.msk [vmem:[#allocation8 + $0x8] sm:$0xff] %vm78_vm0, %v1316_v35  ;;  %v1315_v37 = vadd.f32 %v1306_v36, %v1032_v34 }
 0x8f4   :  { %1317 = vst.msk [vmem:[#allocation8] sm:$0xff] %vm78_vm0, %v1315_v37 }
 0x8f9   :  { %v2768_v38 = vpop.f32.mrf.mxu1 }
 0x8fa   :  { %v1971_v39 = vadd.f32 %v2768_v38, %v3049_v17 }
 0x8fb   :  { %v1965_v40 = vpop.f32.mrf.mxu1 }
 0x8fc   :  { %v1966_v42 = vadd.f32 %v1965_v40, %v3047_v16  ;;  %v1977_v52 = vsel %vm275_vm4, %v1971_v39, -inf }
 0x8fd   :  { %1978 = vmax.xlane.f32.xlu1 %v1977_v52 }
 0x8fe   :  { %v1974_v31 = vsel %vm275_vm4, %v1966_v42, -inf }
 0x901   :  { %1975 = vmax.xlane.f32.xlu0 %v1974_v31  ;;  %v2737_v43 = vpop.f32.mrf.mxu0 }
 0x903   :  { %v1508_v44 = vpop.f32.mrf.mxu0 }
 0x904   :  { %2740 = vmatprep.mubr.msk.f32.mxu0 %vm191_vm1, %v1508_v44 }
 0x905   :  { %2741 = vmatmul.mubr.msk.f32.vlgmr.msra.gmra.mxu0 %vm191_vm1, %v2737_v43 }
 0x906   :  { %2751 = vmatpush3.msra.mxu0 %v1716_v23 }
 0x90e   :  { %1998 = vrot.lane.b32.xlu1 %v3115_v63, %s2983_s12 }
 0x94d   :  { %v1708_v45 = vpop.xlane.xlu0 %1707 }
 0x94e   :  { %2862 = vrcp.f32 %v1708_v45 }
 0x951   :  { %v1705_v46 = vpop.xlane.xlu0 %1704 }
 0x952   :  { %2864 = vrcp.f32 %v1705_v46 }
 0x955   :  { %v1714_v47 = vpop.permute.xlu0 %1713 }
 0x956   :  { %2752 = vmatprep.subr.mxu0 %v1714_v47 }
 0x957   :  { %2753 = vmatpush3.msra.mxu0 %v1714_v47 }
 0x958   :  { %2757 = vmatprep.subr.mxu0 %v3140_v32 }
 0x959   :  { %v2167_v48 = vpop.permute.xlu0 %2166 }
 0x95a   :  { %2785 = vmatprep.mubr.msk.f32.mxu1 %vm191_vm1, %v2167_v48 }
 0x95b   :  { %2786 = vmatmul.mubr.msk.f32.vlgmr.msra.gmra.mxu1 %vm191_vm1, %v2169_v49  ;;  %v2863_v50 = vpop.eup %2862 }
 0x95c   :  { %v1712_v55 = vmul.f32 %v2863_v50, %v2859_v51 }
 0x95f   :  { %v2865_v53 = vpop.eup %2864 }
 0x960   :  { %v1711_v54 = vmul.f32 %v2865_v53, %v2861_v28 }
 0x962   :  { %2754 = vmatprep.mubr.msk.f32.mxu0 %vm275_vm4, %v1711_v54 }
 0x963   :  { %2755 = vmatmul.mubr.msk.f32.vlgmr.msra.gmra.mxu0 %vm275_vm4, %v1712_v55 }
 0x964   :  { %2758 = vmatpush3.msra.mxu0 %v3140_v32 }
 0x986   :  { %v1979_v56 = vpop.xlane.xlu1 %1978 }
 0x987   :  { %v1981_v57 = vsub.f32 %v1971_v39, %v1979_v56 }
 0x989   :  { %v1984_v59 = vmul.f32 1.442695, %v1981_v57 }
 0x98a   :  { %v1999_v60 = vpop.permute.xlu1 %1998  ;;  %v1976_v61 = vpop.xlane.xlu0 %1975 }
 0x98b   :  { %2866 = vpow2.f32 %v1984_v59  ;;  %v1980_v62 = vsub.f32 %v1966_v42, %v1976_v61  ;;  %2769 = vmatprep.subr.mxu0 %v1999_v60 }
 0x98d   :  { %v1982_v6 = vmul.f32 1.442695, %v1980_v62 }
 0x98f   :  { %2868 = vpow2.f32 %v1982_v6 }
 0x998   :  { %v2867_v1 = vpop.eup %2866 }
 0x999   :  { %v1989_v2 = vsel %vm275_vm4, %v2867_v1, 0.0 }
 0x99a   :  { %1990 = vadd.xlane.f32.xlu0 %v1989_v2 }
 0x99c   :  { %v2869_v3 = vpop.eup %2868 }
 0x99d   :  { %v1986_v4 = vsel %vm275_vm4, %v2869_v3, 0.0 }
 0x99e   :  { %1987 = vadd.xlane.f32.xlu0 %v1986_v4 }
 0x9b4   :  { %1996 = vrot.lane.b32.xlu0 %v3119_v0, %s2983_s12 }
 0x9c5   :  { %v2742_v8 = vpop.f32.mrf.mxu0 }
 0x9c7   :  { %v3302_v13 = vpop.f32.mrf.mxu0 }
 0x9c8   :  { %v1598_v49 = vadd.f32 %v3206_v20, %v3302_v13 }
 0xa1b   :  { %v2787_v32 = vpop.f32.mrf.mxu1 }
 0xa1c   :  { %v2254_v5 = vadd.f32 %v2787_v32, %v3049_v17 }
 0xa1d   :  { %v2248_v9 = vpop.f32.mrf.mxu1 }
 0xa1e   :  { %v2249_v10 = vadd.f32 %v2248_v9, %v3047_v16  ;;  %v2260_v11 = vsel %vm275_vm4, %v2254_v5, -inf }
 0xa1f   :  { %2261 = vmax.xlane.f32.xlu0 %v2260_v11 }
 0xa20   :  { %v2257_v12 = vsel %vm275_vm4, %v2249_v10, -inf }
 0xa21   :  { %2258 = vmax.xlane.f32.xlu1 %v2257_v12 }
 0xa23   :  { %v1991_v14 = vpop.xlane.xlu0 %1990  ;;  %v2756_v15 = vpop.f32.mrf.mxu0 }
 0xa24   :  { %2870 = vrcp.f32 %v1991_v14 }
 0xa25   :  { %v1791_v18 = vpop.f32.mrf.mxu0 }
 0xa26   :  { %2759 = vmatprep.mubr.msk.f32.mxu0 %vm191_vm1, %v1791_v18 }
 0xa27   :  { %v1988_v19 = vpop.xlane.xlu0 %1987  ;;  %2760 = vmatmul.mubr.msk.f32.vlgmr.msra.gmra.mxu0 %vm191_vm1, %v2756_v15 }
 0xa28   :  { %2872 = vrcp.f32 %v1988_v19  ;;  %2770 = vmatpush3.msra.mxu0 %v1999_v60 }
 0xa2b   :  { %v1997_v16 = vpop.permute.xlu0 %1996 }
 0xa2c   :  { %2771 = vmatprep.subr.mxu0 %v1997_v16 }
 0xa2d   :  { %2772 = vmatpush3.msra.mxu0 %v1997_v16 }
 0xa2e   :  { %2776 = vmatprep.subr.mxu0 %v3168_v58 }
 0xa31   :  { %v2871_v17 = vpop.eup %2870 }
 0xa32   :  { %v1995_v23 = vmul.f32 %v2871_v17, %v2867_v1 }
 0xa35   :  { %v2873_v21 = vpop.eup %2872 }
 0xa36   :  { %v1994_v22 = vmul.f32 %v2873_v21, %v2869_v3 }
 0xa38   :  { %2773 = vmatprep.mubr.msk.f32.mxu0 %vm275_vm4, %v1994_v22 }
 0xa39   :  { %2774 = vmatmul.mubr.msk.f32.vlgmr.msra.gmra.mxu0 %vm275_vm4, %v1995_v23 }
 0xa3a   :  { %2777 = vmatpush3.msra.mxu0 %v3168_v58  ;;  %v1599_v58 = vadd.f32 %v2742_v8, %v3206_v20 }
 0xaa8   :  { %v2262_v24 = vpop.xlane.xlu0 %2261 }
 0xaa9   :  { %v2264_v25 = vsub.f32 %v2254_v5, %v2262_v24 }
 0xaaa   :  { %v2259_v26 = vpop.xlane.xlu1 %2258 }
 0xaab   :  { %v2267_v51 = vmul.f32 1.442695, %v2264_v25  ;;  %v2263_v27 = vsub.f32 %v2249_v10, %v2259_v26 }
 0xaad   :  { %2874 = vpow2.f32 %v2267_v51  ;;  %v2265_v28 = vmul.f32 1.442695, %v2263_v27 }
 0xaaf   :  { %2876 = vpow2.f32 %v2265_v28 }
 0xaba   :  { %v2875_v7 = vpop.eup %2874 }
 0xabb   :  { %v2272_v29 = vsel %vm275_vm4, %v2875_v7, 0.0 }
 0xabc   :  { %v2877_v30 = vpop.eup %2876  ;;  %2273 = vadd.xlane.f32.xlu0 %v2272_v29 }
 0xabd   :  { %v2269_v33 = vsel %vm275_vm4, %v2877_v30, 0.0 }
 0xabe   :  { %2270 = vadd.xlane.f32.xlu1 %v2269_v33 }
 0xacf   :  { %2281 = vrot.lane.b32.xlu1 %v3115_v63, %s2984_s13 }
 0xad2   :  { %2279 = vrot.lane.b32.xlu0 %v3119_v0, %s2984_s13 }
 0xae7   :  { %v2761_v34 = vpop.f32.mrf.mxu0 }
 0xae8   :  { %v1882_v35 = vadd.f32 %v2761_v34, %v1599_v58 }
 0xae9   :  { %v1872_v36 = vpop.f32.mrf.mxu0 }
 0xaea   :  { %v1881_v50 = vadd.f32 %v1872_v36, %v1598_v49 }
 0xaf9   :  { %v2775_v37 = vpop.f32.mrf.mxu0 }
 0xafb   :  { %v2074_v38 = vpop.f32.mrf.mxu0 }
 0xafc   :  { %2778 = vmatprep.mubr.msk.f32.mxu0 %vm191_vm1, %v2074_v38 }
 0xafd   :  { %2779 = vmatmul.mubr.msk.f32.vlgmr.msra.gmra.mxu0 %vm191_vm1, %v2775_v37 }
 0xb45   :  { %v2274_v39 = vpop.xlane.xlu0 %2273 }
 0xb46   :  { %2878 = vrcp.f32 %v2274_v39 }
 0xb47   :  { %v2271_v40 = vpop.xlane.xlu1 %2270 }
 0xb48   :  { %2880 = vrcp.f32 %v2271_v40 }
 0xb49   :  { %v2280_v63 = vpop.permute.xlu0 %2279 }
 0xb4b   :  { %v2282_v42 = vpop.permute.xlu1 %2281 }
 0xb4c   :  { %2788 = vmatprep.subr.mxu0 %v2282_v42 }
 0xb4d   :  { %2789 = vmatpush3.msra.mxu0 %v2282_v42 }
 0xb4e   :  { %2790 = vmatprep.subr.mxu0 %v2280_v63 }
 0xb4f   :  { %2791 = vmatpush3.msra.mxu0 %v2280_v63 }
 0xb50   :  { %2795 = vmatprep.subr.mxu0 %v3223_v41 }
 0xb53   :  { %v2879_v0 = vpop.eup %2878 }
 0xb54   :  { %v2278_v43 = vmul.f32 %v2879_v0, %v2875_v7 }
 0xb55   :  { %v2881_v52 = vpop.eup %2880 }
 0xb56   :  { %v2277_v31 = vmul.f32 %v2881_v52, %v2877_v30 }
 0xb58   :  { %2792 = vmatprep.mubr.msk.f32.mxu0 %vm275_vm4, %v2277_v31 }
 0xb59   :  { %2793 = vmatmul.mubr.msk.f32.vlgmr.msra.gmra.mxu0 %vm275_vm4, %v2278_v43 }
 0xb5a   :  { %2796 = vmatpush3.msra.mxu0 %v3223_v41 }
 0xbbd   :  { %v2780_v44 = vpop.f32.mrf.mxu0 }
 0xbbe   :  { %v2165_v45 = vadd.f32 %v2780_v44, %v1882_v35 }
 0xbbf   :  { %v2155_v46 = vpop.f32.mrf.mxu0 }
 0xbc0   :  { %v2164_v54 = vadd.f32 %v2155_v46, %v1881_v50 }
 0xc19   :  { %v2794_v47 = vpop.f32.mrf.mxu0 }
 0xc1b   :  { %v2357_v48 = vpop.f32.mrf.mxu0 }
 0xc1c   :  { %2797 = vmatprep.mubr.msk.f32.mxu0 %vm191_vm1, %v2357_v48 }
 0xc1d   :  { %2798 = vmatmul.mubr.msk.f32.vlgmr.msra.gmra.mxu0 %vm191_vm1, %v2794_v47 }
 0xcdd   :  { %v2799_v53 = vpop.f32.mrf.mxu0 }
 0xcde   :  { %v2448_v55 = vadd.f32 %v2799_v53, %v2165_v45 }
 0xcdf   :  { %v2438_v56 = vpop.f32.mrf.mxu0 }
 0xce0   :  { %2450 = vst.msk [vmem:[#allocation8 + $0x18] sm:$0xff] %vm78_vm0, %v2448_v55  ;;  %v2447_v41 = vadd.f32 %v2438_v56, %v2164_v54 }
 0xce2   :  { %2449 = vst.msk [vmem:[#allocation8 + $0x10] sm:$0xff] %vm78_vm0, %v2447_v41 }
 0xce3   :  { %2953 = shalt.err (!%p2950_p5)
}
 0xce4   :  { %2462 = dma.vmem_to_hbm [thread:$0]  %s2457_s16, 512, %s3339_s4, [#allocation4], %s2970_s20, %s2970_s20, %s2971_s21  }
 0xce5   :  { %2966 = dma.done.wait [#allocation4], 512  }
 0xce6   :  { %2967 = vsyncadd [#allocation4], 4294966784 }
 0xce7   :  { %2466 = vsyncpa [#allocation3], 1 }
 0xce8   :  { %2467 = vsyncpa [#allocation6], 1 }
 0xce9   :  { %2468 = vsyncpa [#allocation4], 1 }

</bundles_post_ra>
